<compile_context>
chip_gen: v7x
topology: tpu7x:2x2x1
jax: 0.10.0
libtpu: 0.0.40
codegen_flags: <defaults>
</compile_context>

<pallas_src>
import functools

import jax
import jax.numpy as jnp
from jax.experimental import pallas as pl
from jax.experimental.pallas import tpu as pltpu


def glm_forward_kernel(alpha_ref, x_ref, a_ref, seg_ref, p_ref, conc_ref):
    # alpha_ref: SMEM (1,) scalar-prefetch ref holding alpha = exp(log_alpha).
    # x_ref:   (T, R*C)   lane-packed X rows (R samples per row), streamed.
    # a_ref:   (R*C, R*K) block-diagonal kron(I_R, A_full), resident.
    # seg_ref: (R*K, R*K) block-diagonal kron(I_R, ones(K,K)), resident.
    # p_ref, conc_ref: (T, R*K) lane-dense outputs.
    logits = jnp.dot(x_ref[...], a_ref[...], preferred_element_type=jnp.float32)
    # Stabilize with the per-packed-row max (shared by the R packed samples);
    # the -80 clamp guards the denominator against full underflow even if the
    # samples packed in one row have a huge logit spread.
    row_max = jnp.max(logits, axis=1, keepdims=True)
    e = jnp.exp(jnp.maximum(logits - row_max, -80.0))
    # Per-sample (segment) sums, broadcast back to every lane of the segment:
    # one matmul against the block-diagonal all-ones matrix on the idle MXU.
    denom = jnp.dot(e, seg_ref[...], preferred_element_type=jnp.float32)
    p = e / denom                       # exact divide (approx rcp broke allclose)
    alpha = alpha_ref[0]                # scalar multiply, no broadcast array
    p_ref[...] = p.astype(p_ref.dtype)
    conc_ref[...] = (alpha * p).astype(conc_ref.dtype)


@functools.partial(jax.jit, static_argnames=("tile_packed_rows",))
def glm_forward(X, A, log_alpha, *, tile_packed_rows=1024):
    """Pallas implementation of LassoDirichletMultinomialGLM.forward.

    X:         (N, n_covariates)
    A:         (n_covariates, n_classes - 1)   (learnable parameter)
    log_alpha: (1,)                            (learnable parameter)
    Returns (A_full, alpha, concentration, P) matching the PyTorch module
    (computed in float32; the module itself is float64).
    """
    N, C = X.shape
    K = A.shape[1] + 1  # n_classes

    X = X.astype(jnp.float32)
    A = A.astype(jnp.float32)
    log_alpha = log_alpha.astype(jnp.float32)

    # Parameter setup (glue): A_full = [A | constant zero column], alpha.
    A_full = jnp.concatenate([A, jnp.zeros((C, 1), jnp.float32)], axis=1)
    alpha = jnp.exp(log_alpha)                  # (1,) -- computed once, not per tile

    # Lane-dense packing: R samples per packed row so the class axis fills
    # (close to) all 128 lanes.  For K=8 -> R=16, packed width = 128 exactly.
    R = max(1, 128 // K)
    W = R * K
    Np = ((N + R - 1) // R) * R                 # pad only to a multiple of R
    Xp = X if Np == N else jnp.pad(X, ((0, Np - N), (0, 0)))
    n_packed = Np // R
    x_packed = Xp.reshape(n_packed, R * C)      # free row-major reshape

    a_blk = jnp.kron(jnp.eye(R, dtype=jnp.float32), A_full)              # (R*C, W)
    seg_ones = jnp.kron(jnp.eye(R, dtype=jnp.float32),
                        jnp.ones((K, K), jnp.float32))                   # (W, W)

    # Row-tile size in packed rows: full array if it fits, else a multiple of 8
    # (sublane constraint); ragged last block is clipped by Pallas.
    t = min(tile_packed_rows, n_packed)
    if t < n_packed:
        t = max(8, (t // 8) * 8)
    grid = (pl.cdiv(n_packed, t),)

    p_packed, conc_packed = pl.pallas_call(
        glm_forward_kernel,
        out_shape=(
            jax.ShapeDtypeStruct((n_packed, W), jnp.float32),
            jax.ShapeDtypeStruct((n_packed, W), jnp.float32),
        ),
        grid_spec=pltpu.PrefetchScalarGridSpec(
            num_scalar_prefetch=1,               # alpha lands in SMEM
            grid=grid,
            in_specs=[
                pl.BlockSpec((t, R * C), lambda i, a: (i, 0)),   # streamed X rows
                pl.BlockSpec((R * C, W), lambda i, a: (0, 0)),   # resident A_blk
                pl.BlockSpec((W, W), lambda i, a: (0, 0)),       # resident seg_ones
            ],
            out_specs=[
                pl.BlockSpec((t, W), lambda i, a: (i, 0)),
                pl.BlockSpec((t, W), lambda i, a: (i, 0)),
            ],
        ),
        compiler_params=pltpu.CompilerParams(
            dimension_semantics=("parallel",),    # independent row-tiles -> megacore
            vmem_limit_bytes=32 * 1024 * 1024,
        ),
    )(alpha, x_packed, a_blk, seg_ones)

    # Free reshape back to (N, K); the [:N] slice only copies when N % R != 0.
    P = p_packed.reshape(Np, K)[:N]
    concentration = conc_packed.reshape(Np, K)[:N]
    return A_full, alpha, concentration, P


def _reference(X, A, log_alpha):
    """Plain-JAX reference (same math as the PyTorch module, in f32)."""
    A_full = jnp.concatenate([A, jnp.zeros((A.shape[0], 1), A.dtype)], axis=1)
    logits = jnp.dot(X, A_full, precision=jax.lax.Precision.HIGHEST)
    P = jax.nn.softmax(logits, axis=1)
    alpha = jnp.exp(log_alpha)
    return A_full, alpha, alpha * P, P


if __name__ == "__main__":
    # Shapes consistent with the module: n_covariates=16, n_classes=8.
    n_covariates, n_classes = 16, 8
    key = jax.random.PRNGKey(0)
    kx1, ka1, kx2, ka2 = jax.random.split(key, 4)
    log_alpha = jnp.ones((1,), dtype=jnp.float32)

    # Tolerance budget: the module is float64 while the kernel runs in float32,
    # and f32 matmuls may go through reduced-precision MXU/XLA passes depending
    # on platform defaults; structural (packing/layout) bugs would be O(1).
    TOL = 1e-2

    # ---- Case 1: N a multiple of the packing factor (fully copy-free path) ----
    n1 = 96
    X1 = jax.random.normal(kx1, (n1, n_covariates), dtype=jnp.float32)
    A1 = 0.1 * jax.random.normal(ka1, (n_covariates, n_classes - 1),
                                 dtype=jnp.float32)
    A1_full, alpha1, conc1, P1 = glm_forward(X1, A1, log_alpha)
    jax.block_until_ready((A1_full, alpha1, conc1, P1))

    A1r, alpha1r, conc1r, P1r = _reference(X1, A1, log_alpha)
    assert P1.shape == (n1, n_classes) and conc1.shape == (n1, n_classes)
    assert jnp.allclose(A1_full, A1r)
    assert jnp.allclose(alpha1, alpha1r, rtol=1e-6)
    assert jnp.allclose(P1, P1r, atol=TOL)
    assert jnp.allclose(conc1, conc1r, atol=TOL)
    assert jnp.allclose(jnp.sum(P1, axis=1), 1.0, atol=TOL)
    # Kernel-internal consistency (same f32 values either way -> tight check).
    assert jnp.allclose(conc1, alpha1 * P1, atol=1e-6)

    # ---- Case 2: ragged N (not a multiple of 16) + multi-tile grid with a ----
    # ---- clipped partial last block.                                       ----
    n2 = 300
    X2 = jax.random.normal(kx2, (n2, n_covariates), dtype=jnp.float32)
    A2 = 0.1 * jax.random.normal(ka2, (n_covariates, n_classes - 1),
                                 dtype=jnp.float32)
    A2_full, alpha2, conc2, P2 = glm_forward(X2, A2, log_alpha,
                                             tile_packed_rows=8)
    jax.block_until_ready((conc2, P2))

    _, _, conc2r, P2r = _reference(X2, A2, log_alpha)
    assert P2.shape == (n2, n_classes)
    assert jnp.allclose(P2, P2r, atol=TOL)
    assert jnp.allclose(conc2, conc2r, atol=TOL)
    assert jnp.allclose(jnp.sum(P2, axis=1), 1.0, atol=TOL)

    print("KERNEL_OK")
</pallas_src>

<mosaic_0001>
module attributes {stable_mosaic.version = 11 : i64} {
  func.func @glm_forward_kernel(%arg0: i32, %arg1: memref<1xf32, #tpu.memory_space<smem>>, %arg2: memref<6x256xf32, #tpu.memory_space<vmem>>, %arg3: memref<256x128xf32, #tpu.memory_space<vmem>>, %arg4: memref<128x128xf32, #tpu.memory_space<vmem>>, %arg5: memref<6x128xf32, #tpu.memory_space<vmem>>, %arg6: memref<6x128xf32, #tpu.memory_space<vmem>>) attributes {dimension_semantics = [#tpu.dimension_semantics<parallel>], iteration_bounds = array<i64: 1>, scalar_prefetch = 1 : i64, scratch_operands = 0 : i64, tpu.core_type = #tpu.core_type<tc>, window_params = [{transform_indices = @transform_0, window_bounds = array<i64: 6, 256>}, {pipeline_mode = #tpu.pipeline_mode<synchronous>, transform_indices = @transform_1, window_bounds = array<i64: 256, 128>}, {pipeline_mode = #tpu.pipeline_mode<synchronous>, transform_indices = @transform_2, window_bounds = array<i64: 128, 128>}, {transform_indices = @transform_3, window_bounds = array<i64: 6, 128>}, {transform_indices = @transform_4, window_bounds = array<i64: 6, 128>}]} {
    %c0 = arith.constant 0 : index
    %c0_0 = arith.constant 0 : index
    %0 = vector.load %arg2[%c0, %c0_0] : memref<6x256xf32, #tpu.memory_space<vmem>>, vector<6x256xf32>
    %c0_1 = arith.constant 0 : index
    %c0_2 = arith.constant 0 : index
    %1 = vector.load %arg3[%c0_1, %c0_2] : memref<256x128xf32, #tpu.memory_space<vmem>>, vector<256x128xf32>
    %cst = arith.constant dense<0.000000e+00> : vector<6x128xf32>
    %2 = tpu.matmul %0, %1, %cst {dimension_numbers = #tpu.dot_dimension_numbers<[1], [0], [0], [1], [0, 0, 1, 1], [], []>} : vector<6x256xf32>, vector<256x128xf32>, vector<6x128xf32> -> vector<6x128xf32>
    %cst_3 = arith.constant dense<0xFF800000> : vector<6xf32>
    %3 = vector.multi_reduction <maximumf>, %2, %cst_3 [1] : vector<6x128xf32> to vector<6xf32>
    %4 = vector.shape_cast %3 : vector<6xf32> to vector<6x1xf32>
    %5 = vector.broadcast %4 : vector<6x1xf32> to vector<6x128xf32>
    %6 = arith.subf %2, %5 : vector<6x128xf32>
    %cst_4 = arith.constant -8.000000e+01 : f32
    %7 = vector.broadcast %cst_4 : f32 to vector<6x128xf32>
    %8 = arith.maximumf %6, %7 : vector<6x128xf32>
    %9 = math.exp %8 : vector<6x128xf32>
    %c0_5 = arith.constant 0 : index
    %c0_6 = arith.constant 0 : index
    %10 = vector.load %arg4[%c0_5, %c0_6] : memref<128x128xf32, #tpu.memory_space<vmem>>, vector<128x128xf32>
    %cst_7 = arith.constant dense<0.000000e+00> : vector<6x128xf32>
    %11 = tpu.matmul %9, %10, %cst_7 {dimension_numbers = #tpu.dot_dimension_numbers<[1], [0], [0], [1], [0, 0, 1, 1], [], []>} : vector<6x128xf32>, vector<128x128xf32>, vector<6x128xf32> -> vector<6x128xf32>
    %12 = arith.divf %9, %11 : vector<6x128xf32>
    %c0_8 = arith.constant 0 : index
    %13 = memref.load %arg1[%c0_8] : memref<1xf32, #tpu.memory_space<smem>>
    %c0_9 = arith.constant 0 : index
    %c0_10 = arith.constant 0 : index
    %14 = vector.load %arg5[%c0_9, %c0_10] : memref<6x128xf32, #tpu.memory_space<vmem>>, vector<6x128xf32>
    tpu.vector_store %arg5[%c0_9, %c0_10], %12 {strides = array<i32>} : memref<6x128xf32, #tpu.memory_space<vmem>>, vector<6x128xf32>,
    %15 = vector.broadcast %13 : f32 to vector<6x128xf32>
    %16 = arith.mulf %15, %12 : vector<6x128xf32>
    %c0_11 = arith.constant 0 : index
    %c0_12 = arith.constant 0 : index
    %17 = vector.load %arg6[%c0_11, %c0_12] : memref<6x128xf32, #tpu.memory_space<vmem>>, vector<6x128xf32>
    tpu.vector_store %arg6[%c0_11, %c0_12], %16 {strides = array<i32>} : memref<6x128xf32, #tpu.memory_space<vmem>>, vector<6x128xf32>,
    return
  }
  func.func @transform_0(%arg0: i32, %arg1: memref<1xf32, #tpu.memory_space<smem>>) -> (i32, i32) {
    %c0_i32 = arith.constant 0 : i32
    %c0_i32_0 = arith.constant 0 : i32
    return %arg0, %c0_i32 : i32, i32
  }
  func.func @transform_1(%arg0: i32, %arg1: memref<1xf32, #tpu.memory_space<smem>>) -> (i32, i32) {
    %c0_i32 = arith.constant 0 : i32
    %c0_i32_0 = arith.constant 0 : i32
    %c0_i32_1 = arith.constant 0 : i32
    return %c0_i32, %c0_i32_0 : i32, i32
  }
  func.func @transform_2(%arg0: i32, %arg1: memref<1xf32, #tpu.memory_space<smem>>) -> (i32, i32) {
    %c0_i32 = arith.constant 0 : i32
    %c0_i32_0 = arith.constant 0 : i32
    %c0_i32_1 = arith.constant 0 : i32
    return %c0_i32, %c0_i32_0 : i32, i32
  }
  func.func @transform_3(%arg0: i32, %arg1: memref<1xf32, #tpu.memory_space<smem>>) -> (i32, i32) {
    %c0_i32 = arith.constant 0 : i32
    %c0_i32_0 = arith.constant 0 : i32
    return %arg0, %c0_i32 : i32, i32
  }
  func.func @transform_4(%arg0: i32, %arg1: memref<1xf32, #tpu.memory_space<smem>>) -> (i32, i32) {
    %c0_i32 = arith.constant 0 : i32
    %c0_i32_0 = arith.constant 0 : i32
    return %arg0, %c0_i32 : i32, i32
  }
}

</mosaic_0001>

<bundles_post_ra>
// kernel: glm_forward.1
= control target key start
LH: loop header
LB: loop body
LE: loop exit
PB: predicated region body
PF: predicated region fallthrough
CT: control target
= control target key end

     0   :  { %v381_v50 = vmov 0.0|0.0   ;;  %vm122_vm0 = vcmask 1045504   ;;  %vm382_vm1 = vmmov 0   ;;  %s573_s2 = inlined_call_operand.vmem [shape: f32[256,128], index: 2, kind: input, shape index: {}]   ;;  %s574_s1 = inlined_call_operand.vmem [shape: f32[6,256], index: 1, kind: input, shape index: {}]   ;;  %s575_s3 = inlined_call_operand.vmem [shape: f32[128,128], index: 3, kind: input, shape index: {}]   ;;  %s576_s0 = inlined_call_operand.<no memory space> [shape: f32[1], index: 0, kind: input, shape index: {}]   ;;  %s577_s4 = inlined_call_operand.vmem [shape: f32[6,128], index: 4, kind: output, shape index: {0}]   ;;  %s578_s5 = inlined_call_operand.vmem [shape: f32[6,128], index: 5, kind: output, shape index: {1}]  }
   0x1   :  { %v36_v0 = vld [vmem:[%s573_s2 + $0x80] sm:$0xff]  ;;  %v37_v1 = vld [vmem:[%s573_s2 + $0x88] sm:$0xff]  ;;  %v38_v5 = vld [vmem:[%s573_s2 + $0x90] sm:$0xff]  ;;  %350 = vmatprep.subr.bf16.mxu1 %v381_v50 }
   0x2   :  { %v20_v2 = vld [vmem:[%s573_s2] sm:$0xff]  ;;  %v318_v3 = vpack.c.bf16 %v37_v1, %v36_v0  ;;  %v21_v4 = vld [vmem:[%s573_s2 + $0x8] sm:$0xff]  ;;  %v39_v6 = vld [vmem:[%s573_s2 + $0x98] sm:$0xff] }
   0x3   :  { %v320_v7 = vpack.c.bf16 %v21_v4, %v20_v2  ;;  %v322_v8 = vpack.c.bf16 %v39_v6, %v38_v5  ;;  %v22_v9 = vld [vmem:[%s573_s2 + $0x10] sm:$0xff]  ;;  %v23_v10 = vld [vmem:[%s573_s2 + $0x18] sm:$0xff]  ;;  %v40_v11 = vld [vmem:[%s573_s2 + $0xa0] sm:$0xff] }
   0x4   :  { %319 = vmatprep.subr.bf16.mxu0 %v318_v3  ;;  %v41_v12 = vld [vmem:[%s573_s2 + $0xa8] sm:$0xff]  ;;  %v324_v13 = vpack.c.bf16 %v23_v10, %v22_v9  ;;  %v24_v15 = vld [vmem:[%s573_s2 + $0x20] sm:$0xff]  ;;  %v42_v17 = vld [vmem:[%s573_s2 + $0xb0] sm:$0xff] }
   0x5   :  { %321 = vmatpush3.bf16.msra.mxu0 %v320_v7  ;;  %v326_v14 = vpack.c.bf16 %v41_v12, %v40_v11  ;;  %v25_v16 = vld [vmem:[%s573_s2 + $0x28] sm:$0xff]  ;;  %v43_v18 = vld [vmem:[%s573_s2 + $0xb8] sm:$0xff]  ;;  %v26_v21 = vld [vmem:[%s573_s2 + $0x30] sm:$0xff] }
   0x6   :  { %323 = vmatprep.subr.bf16.mxu0 %v322_v8  ;;  %v328_v19 = vpack.c.bf16 %v25_v16, %v24_v15  ;;  %v330_v20 = vpack.c.bf16 %v43_v18, %v42_v17  ;;  %v27_v22 = vld [vmem:[%s573_s2 + $0x38] sm:$0xff]  ;;  %v44_v23 = vld [vmem:[%s573_s2 + $0xc0] sm:$0xff]  ;;  %v45_v24 = vld [vmem:[%s573_s2 + $0xc8] sm:$0xff] }
   0x7   :  { %v19_v25 = vld [vmem:[%s574_s1 + $0x8] sm:$0x3f]  ;;  %v332_v26 = vpack.c.bf16 %v27_v22, %v26_v21  ;;  %v334_v27 = vpack.c.bf16 %v45_v24, %v44_v23  ;;  %v28_v28 = vld [vmem:[%s573_s2 + $0x40] sm:$0xff]  ;;  %v46_v30 = vld [vmem:[%s573_s2 + $0xd0] sm:$0xff]  ;;  %v220_v24 = vstv %s576_s0 }
   0x8   :  { %116 = vmatprep.mubr.f32.mxu0 %v19_v25  ;;  %v29_v29 = vld [vmem:[%s573_s2 + $0x48] sm:$0xff]  ;;  %v47_v31 = vld [vmem:[%s573_s2 + $0xd8] sm:$0xff]  ;;  %v30_v34 = vld [vmem:[%s573_s2 + $0x50] sm:$0xff] }
   0x9   :  { %325 = vmatpush3.bf16.msra.mxu0 %v324_v13  ;;  %v336_v32 = vpack.c.bf16 %v29_v29, %v28_v28  ;;  %v338_v33 = vpack.c.bf16 %v47_v31, %v46_v30  ;;  %v31_v35 = vld [vmem:[%s573_s2 + $0x58] sm:$0xff]  ;;  %v48_v36 = vld [vmem:[%s573_s2 + $0xe0] sm:$0xff]  ;;  %v49_v37 = vld [vmem:[%s573_s2 + $0xe8] sm:$0xff] }
   0xa   :  { %327 = vmatprep.subr.bf16.mxu0 %v326_v14  ;;  %v340_v38 = vpack.c.bf16 %v31_v35, %v30_v34  ;;  %v342_v39 = vpack.c.bf16 %v49_v37, %v48_v36  ;;  %v32_v40 = vld [vmem:[%s573_s2 + $0x60] sm:$0xff]  ;;  %v33_v41 = vld [vmem:[%s573_s2 + $0x68] sm:$0xff]  ;;  %v50_v42 = vld [vmem:[%s573_s2 + $0xf0] sm:$0xff]  ;;  %v383_v14 = vmov 0.0  }
   0xb   :  { %v51_v43 = vld [vmem:[%s573_s2 + $0xf8] sm:$0xff]  ;;  %v344_v44 = vpack.c.bf16 %v33_v41, %v32_v40  ;;  %v34_v46 = vld [vmem:[%s573_s2 + $0x70] sm:$0xff]  ;;  %v18_v49 = vld [vmem:[%s574_s1] sm:$0x3f]  ;;  %315 = vmatprep.mubr.msk.f32.mxu1 %vm382_vm1, %v383_v14 }
   0xc   :  { %v346_v45 = vpack.c.bf16 %v51_v43, %v50_v42  ;;  %v35_v47 = vld [vmem:[%s573_s2 + $0x78] sm:$0xff]  ;;  %v130_v51 = vld [vmem:[%s575_s3] sm:$0xff]  ;;  %v131_v52 = vld [vmem:[%s575_s3 + $0x8] sm:$0xff] }
   0xd   :  { %329 = vmatpush3.bf16.msra.mxu0 %v328_v19  ;;  %v348_v48 = vpack.c.bf16 %v35_v47, %v34_v46  ;;  %v132_v53 = vld [vmem:[%s575_s3 + $0x10] sm:$0xff]  ;;  %v351_v54 = vpack.c.bf16 %v131_v52, %v130_v51  ;;  %v133_v55 = vld [vmem:[%s575_s3 + $0x18] sm:$0xff]  ;;  %v134_v57 = vld [vmem:[%s575_s3 + $0x20] sm:$0xff] }
   0xe   :  { %331 = vmatprep.subr.bf16.mxu0 %v330_v20  ;;  %v354_v56 = vpack.c.bf16 %v133_v55, %v132_v53  ;;  %v135_v58 = vld [vmem:[%s575_s3 + $0x28] sm:$0xff]  ;;  %v136_v60 = vld [vmem:[%s575_s3 + $0x30] sm:$0xff]  ;;  %v137_v61 = vld [vmem:[%s575_s3 + $0x38] sm:$0xff] }
   0xf   :  { %352 = vmatpush3.bf16.msra.mxu1 %v351_v54  ;;  %v357_v59 = vpack.c.bf16 %v135_v58, %v134_v57  ;;  %v360_v62 = vpack.c.bf16 %v137_v61, %v136_v60  ;;  %v138_v3 = vld [vmem:[%s575_s3 + $0x40] sm:$0xff]  ;;  %v139_v4 = vld [vmem:[%s575_s3 + $0x48] sm:$0xff]  ;;  %v140_v6 = vld [vmem:[%s575_s3 + $0x50] sm:$0xff] }
  0x10   :  { %353 = vmatprep.subr.bf16.mxu1 %v381_v50  ;;  %v363_v5 = vpack.c.bf16 %v139_v4, %v138_v3  ;;  %v141_v7 = vld [vmem:[%s575_s3 + $0x58] sm:$0xff]  ;;  %v142_v9 = vld [vmem:[%s575_s3 + $0x60] sm:$0xff]  ;;  %v143_v10 = vld [vmem:[%s575_s3 + $0x68] sm:$0xff] }
  0x11   :  { %333 = vmatpush3.bf16.msra.mxu0 %v332_v26  ;;  %v366_v8 = vpack.c.bf16 %v141_v7, %v140_v6  ;;  %v369_v11 = vpack.c.bf16 %v143_v10, %v142_v9  ;;  %v144_v12 = vld [vmem:[%s575_s3 + $0x70] sm:$0xff]  ;;  %v145_v13 = vld [vmem:[%s575_s3 + $0x78] sm:$0xff] }
  0x12   :  { %335 = vmatprep.subr.bf16.mxu0 %v334_v27  ;;  %v372_v15 = vpack.c.bf16 %v145_v13, %v144_v12 }
  0x13   :  { %355 = vmatpush3.bf16.msra.mxu1 %v354_v56 }
  0x14   :  { %356 = vmatprep.subr.bf16.mxu1 %v381_v50 }
  0x15   :  { %337 = vmatpush3.bf16.msra.mxu0 %v336_v32 }
  0x16   :  { %339 = vmatprep.subr.bf16.mxu0 %v338_v33 }
  0x17   :  { %358 = vmatpush3.bf16.msra.mxu1 %v357_v59 }
  0x18   :  { %359 = vmatprep.subr.bf16.mxu1 %v381_v50 }
  0x19   :  { %341 = vmatpush3.bf16.msra.mxu0 %v340_v38 }
  0x1a   :  { %343 = vmatprep.subr.bf16.mxu0 %v342_v39 }
  0x1b   :  { %361 = vmatpush3.bf16.msra.mxu1 %v360_v62 }
  0x1c   :  { %362 = vmatprep.subr.bf16.mxu1 %v381_v50 }
  0x1d   :  { %345 = vmatpush3.bf16.msra.mxu0 %v344_v44 }
  0x1e   :  { %347 = vmatprep.subr.bf16.mxu0 %v346_v45 }
  0x1f   :  { %364 = vmatpush3.bf16.msra.mxu1 %v363_v5 }
  0x20   :  { %365 = vmatprep.subr.bf16.mxu1 %v381_v50 }
  0x21   :  { %349 = vmatpush3.bf16.msra.mxu0 %v348_v48 }
  0x23   :  { %367 = vmatpush3.bf16.msra.mxu1 %v366_v8 }
  0x24   :  { %117 = vmatmul.mubr.f32.vlgmr.msra.gmra.mrb[0].mxu0 %v18_v49  ;;  %368 = vmatprep.subr.bf16.mxu1 %v381_v50 }
  0x27   :  { %370 = vmatpush3.bf16.msra.mxu1 %v369_v11 }
  0x28   :  { %371 = vmatprep.subr.bf16.mxu1 %v381_v50 }
  0x2b   :  { %373 = vmatpush3.bf16.msra.mxu1 %v372_v15 }
  0xf7   :  { %v263_v63 = vpop.f32.mrb[0].mxu0 }
  0xf8   :  { %v264_v0 = vpop.f32.mrb[1].mxu0 }
  0xf9   :  { %v265_v1 = vadd.f32 %v264_v0, %v263_v63 }
  0xfb   :  { %v123_v2 = vsel %vm122_vm0, %v265_v1, -inf }
  0xfc   :  { %124 = vmax.xlane.f32.xlu0 %v123_v2 }
 0x189   :  { %v125_v16 = vpop.xlane.xlu0 %124 }
 0x18a   :  { %v126_v17 = vsub.f32 %v265_v1, %v125_v16 }
 0x18c   :  { %v127_v18 = vmax.f32 %v126_v17, -80.0 }
 0x18e   :  { %v128_v19 = vmul.f32 1.442695, %v127_v18 }
 0x190   :  { %377 = vpow2.f32 %v128_v19 }
 0x19a   :  { %v378_v20 = vpop.eup %377 }
 0x19b   :  { %316 = vmatmul.mubr.f32.vlgmr.msra.gmra.mrb[0].mxu1 %v378_v20 }
 0x26e   :  { %v212_v21 = vpop.f32.mrb[0].mxu1 }
 0x26f   :  { %379 = vrcp.f32 %v212_v21  ;;  %v317_v22 = vpop.f32.mrb[1].mxu1 }
 0x279   :  { %v380_v23 = vpop.eup %379 }
 0x27a   :  { %v217_v25 = vmul.f32 %v380_v23, %v378_v20 }
 0x27c   :  { %219 = vst [vmem:[%s577_s4] sm:$0x3f] %v217_v25  ;;  %v221_v26 = vmul.f32 %v220_v24, %v217_v25 }
 0x27e   :  { %222 = vst [vmem:[%s578_s5] sm:$0x3f] %v221_v26 }

</bundles_post_ra>
